<compile_context>
chip_gen: v7x
topology: tpu7x:2x2x1
jax: 0.10.0
libtpu: 0.0.40
codegen_flags: <defaults>
</compile_context>

<pallas_src>
import jax
import jax.numpy as jnp
from jax.experimental import pallas as pl
from jax.experimental.pallas import tpu as pltpu
from jax.scipy.linalg import block_diag


def gas_temp_kernel(xp_ref, w1_ref, b1_ref, w2_ref, b2_ref, o_ref):
    """One batch tile of  relu(x @ W1.T + b1) @ W2[0].T + b2[0].

    xp_ref: (tile_rows, pack*in_dim)  packed input (pack batch elems per row)
    w1_ref: (pack*in_dim, pack*hidden) block-diag replicated W1.T   (resident)
    b1_ref: (1, pack*hidden)           replicated b1                (resident)
    w2_ref: (pack*hidden, pack)        block-diag replicated W2[0]  (resident)
    b2_ref: (1, 1) in SMEM             scalar b2[0]
    o_ref : (tile_rows, pack)          pack outputs per row
    """
    h = jnp.dot(xp_ref[...], w1_ref[...], preferred_element_type=jnp.float32)  # MXU
    h = jnp.maximum(h + b1_ref[...], 0.0)                                      # VPU
    y = jnp.dot(h, w2_ref[...], preferred_element_type=jnp.float32)            # MXU
    o_ref[...] = (y + b2_ref[0, 0]).astype(o_ref.dtype)


def _choose_tile_rows(rows, tile_batch, pack):
    """Packed rows per grid step: large enough to amortize the ~0.35us/step
    overhead, a multiple of 8 (sublane granule) unless it covers the whole
    array, and split >=2 ways when there is enough work so the 'parallel'
    axis can balance across both TensorCores on v7x."""
    tr = max(1, tile_batch // max(1, pack))
    if tr >= rows:
        if rows >= 1024:                       # enough work: split for megacore
            tr = ((rows + 15) // 16) * 8       # ~rows/2, multiple of 8
        else:
            return rows                        # single full-array tile
    tr = max(8, (tr // 8) * 8)
    return rows if tr >= rows else tr


def gas_temp_net(x, w1, b1, w2, b2, *, tile_batch=32768):
    """GasTempNet forward:  (relu(x @ w1.T + b1) @ w2.T + b2)[:, 0]  ->  (B,)

    x : (B, in_dim) float32 or bfloat16 -- consumed in native layout, never
        transposed or cast in the wrapper.
    w1: (hidden, in_dim), b1: (hidden,)     torch nn.Linear (out, in) layout
    w2: (out_dim, hidden), b2: (out_dim,)
    """
    B, in_dim = x.shape
    hidden = w1.shape[0]

    # --- pack `pack` batch rows into one lane-dense row (bitcast reshape) ---
    pack = max(1, min(8, 128 // max(1, in_dim)))
    b_pad = pl.cdiv(B, pack) * pack
    if b_pad != B:
        # TODO(synk): rare path -- jnp.pad copies x once; B % pack == 0 avoids it.
        x = jnp.pad(x, ((0, b_pad - B), (0, 0)))
    rows = b_pad // pack
    xp = x.reshape(rows, pack * in_dim)

    # --- tiny resident weights, replicated block-diagonally (built once) ---
    w1t = w1.T.astype(jnp.float32)                          # (in_dim, hidden), keep f32
    w1_big = block_diag(*([w1t] * pack))                    # (pack*in_dim, pack*hidden)
    b1_big = jnp.tile(b1.astype(jnp.float32), pack).reshape(1, pack * hidden)
    w2_col = w2[0].astype(jnp.float32).reshape(hidden, 1)   # fused [:, 0] slice
    w2_big = block_diag(*([w2_col] * pack))                 # (pack*hidden, pack)
    b2_s = b2[0].astype(jnp.float32).reshape(1, 1)          # scalar -> SMEM

    tile_rows = _choose_tile_rows(rows, tile_batch, pack)
    grid = (pl.cdiv(rows, tile_rows),)

    flops = int(2 * B * (in_dim * hidden + hidden))
    bytes_accessed = int(xp.size * xp.dtype.itemsize + b_pad * 4
                         + (w1_big.size + b1_big.size + w2_big.size) * 4)

    yp = pl.pallas_call(
        gas_temp_kernel,
        out_shape=jax.ShapeDtypeStruct((rows, pack), jnp.float32),
        grid_spec=pltpu.PrefetchScalarGridSpec(
            num_scalar_prefetch=0,
            grid=grid,
            in_specs=[
                pl.BlockSpec((tile_rows, pack * in_dim), lambda i: (i, 0)),      # x tile
                pl.BlockSpec((pack * in_dim, pack * hidden), lambda i: (0, 0)),  # W1 (resident)
                pl.BlockSpec((1, pack * hidden), lambda i: (0, 0)),              # b1 (resident)
                pl.BlockSpec((pack * hidden, pack), lambda i: (0, 0)),           # W2 col 0
                pl.BlockSpec(memory_space=pltpu.SMEM),                           # b2[0] scalar
            ],
            out_specs=pl.BlockSpec((tile_rows, pack), lambda i: (i, 0)),
        ),
        compiler_params=pltpu.CompilerParams(
            dimension_semantics=("parallel",),          # shard tiles across TCs on v7x
            vmem_limit_bytes=48 * 1024 * 1024,          # within v7x 64 MiB per-core VMEM
        ),
        cost_estimate=pl.CostEstimate(
            flops=flops, transcendentals=0, bytes_accessed=bytes_accessed),
    )(xp, w1_big, b1_big, w2_big, b2_s)

    return yp.reshape(b_pad)[:B]


if __name__ == "__main__":
    in_dim, hidden_dim, out_dim = 16, 32, 4

    key = jax.random.PRNGKey(0)
    kx, k1, k2, k3, k4 = jax.random.split(key, 5)

    # PyTorch nn.Linear-like params stored in torch (out, in) layout.
    bound1 = 1.0 / jnp.sqrt(in_dim)
    bound2 = 1.0 / jnp.sqrt(hidden_dim)
    w1 = jax.random.uniform(k1, (hidden_dim, in_dim), jnp.float32, -bound1, bound1)
    b1 = jax.random.uniform(k2, (hidden_dim,), jnp.float32, -bound1, bound1)
    w2 = jax.random.uniform(k3, (out_dim, hidden_dim), jnp.float32, -bound2, bound2)
    b2 = jax.random.uniform(k4, (out_dim,), jnp.float32, -bound2, bound2)

    def reference(xx):
        return (jnp.maximum(xx @ w1.T + b1, 0.0) @ w2.T + b2)[:, 0]

    # Small-shape check (single packed tile).
    x_small = jax.random.normal(kx, (8, in_dim), jnp.float32)
    out = gas_temp_net(x_small, w1, b1, w2, b2)
    jax.block_until_ready(out)
    assert out.shape == (8,)
    assert jnp.allclose(out, reference(x_small), atol=1e-3, rtol=1e-3), "small mismatch"

    # Batch not divisible by the pack factor (exercises the padding path).
    x_odd = jax.random.normal(kx, (13, in_dim), jnp.float32)
    out_odd = gas_temp_net(x_odd, w1, b1, w2, b2)
    jax.block_until_ready(out_odd)
    assert out_odd.shape == (13,)
    assert jnp.allclose(out_odd, reference(x_odd), atol=1e-3, rtol=1e-3), "odd-batch mismatch"

    # Multi-tile grid with the "parallel" axis (2 tiles).
    x_big = jax.random.normal(kx, (4096, in_dim), jnp.float32)
    out_big = gas_temp_net(x_big, w1, b1, w2, b2, tile_batch=2048)
    jax.block_until_ready(out_big)
    assert jnp.allclose(out_big, reference(x_big), atol=1e-3, rtol=1e-3), "tiled mismatch"

    print("KERNEL_OK")
</pallas_src>

<mosaic_0001>
module attributes {stable_mosaic.version = 11 : i64} {
  func.func @gas_temp_kernel(%arg0: i32, %arg1: memref<1x128xf32, #tpu.memory_space<vmem>>, %arg2: memref<128x256xf32, #tpu.memory_space<vmem>>, %arg3: memref<1x256xf32, #tpu.memory_space<vmem>>, %arg4: memref<256x8xf32, #tpu.memory_space<vmem>>, %arg5: memref<1x1xf32, #tpu.memory_space<smem>>, %arg6: memref<1x8xf32, #tpu.memory_space<vmem>>) attributes {dimension_semantics = [#tpu.dimension_semantics<parallel>], iteration_bounds = array<i64: 1>, scalar_prefetch = 0 : i64, scratch_operands = 0 : i64, tpu.core_type = #tpu.core_type<tc>, window_params = [{transform_indices = @transform_0, window_bounds = array<i64: 1, 128>}, {pipeline_mode = #tpu.pipeline_mode<synchronous>, transform_indices = @transform_1, window_bounds = array<i64: 128, 256>}, {pipeline_mode = #tpu.pipeline_mode<synchronous>, transform_indices = @transform_2, window_bounds = array<i64: 1, 256>}, {pipeline_mode = #tpu.pipeline_mode<synchronous>, transform_indices = @transform_3, window_bounds = array<i64: 256, 8>}, {transform_indices = @transform_4, window_bounds = array<i64: 1, 1>}, {transform_indices = @transform_5, window_bounds = array<i64: 1, 8>}]} {
    %c0 = arith.constant 0 : index
    %c0_0 = arith.constant 0 : index
    %0 = vector.load %arg1[%c0, %c0_0] : memref<1x128xf32, #tpu.memory_space<vmem>>, vector<1x128xf32>
    %c0_1 = arith.constant 0 : index
    %c0_2 = arith.constant 0 : index
    %1 = vector.load %arg2[%c0_1, %c0_2] : memref<128x256xf32, #tpu.memory_space<vmem>>, vector<128x256xf32>
    %cst = arith.constant dense<0.000000e+00> : vector<1x256xf32>
    %2 = tpu.matmul %0, %1, %cst {dimension_numbers = #tpu.dot_dimension_numbers<[1], [0], [0], [1], [0, 0, 1, 1], [], []>} : vector<1x128xf32>, vector<128x256xf32>, vector<1x256xf32> -> vector<1x256xf32>
    %c0_3 = arith.constant 0 : index
    %c0_4 = arith.constant 0 : index
    %3 = vector.load %arg3[%c0_3, %c0_4] : memref<1x256xf32, #tpu.memory_space<vmem>>, vector<1x256xf32>
    %4 = arith.addf %2, %3 : vector<1x256xf32>
    %cst_5 = arith.constant 0.000000e+00 : f32
    %5 = vector.broadcast %cst_5 : f32 to vector<1x256xf32>
    %6 = arith.maximumf %4, %5 : vector<1x256xf32>
    %c0_6 = arith.constant 0 : index
    %c0_7 = arith.constant 0 : index
    %7 = vector.load %arg4[%c0_6, %c0_7] : memref<256x8xf32, #tpu.memory_space<vmem>>, vector<256x8xf32>
    %cst_8 = arith.constant dense<0.000000e+00> : vector<1x8xf32>
    %8 = tpu.matmul %6, %7, %cst_8 {dimension_numbers = #tpu.dot_dimension_numbers<[1], [0], [0], [1], [0, 0, 1, 1], [], []>} : vector<1x256xf32>, vector<256x8xf32>, vector<1x8xf32> -> vector<1x8xf32>
    %c0_9 = arith.constant 0 : index
    %c0_10 = arith.constant 0 : index
    %9 = memref.load %arg5[%c0_9, %c0_10] : memref<1x1xf32, #tpu.memory_space<smem>>
    %10 = vector.broadcast %9 : f32 to vector<1x8xf32>
    %11 = arith.addf %8, %10 : vector<1x8xf32>
    %c0_11 = arith.constant 0 : index
    %c0_12 = arith.constant 0 : index
    %12 = vector.load %arg6[%c0_11, %c0_12] : memref<1x8xf32, #tpu.memory_space<vmem>>, vector<1x8xf32>
    tpu.vector_store %arg6[%c0_11, %c0_12], %11 {strides = array<i32>} : memref<1x8xf32, #tpu.memory_space<vmem>>, vector<1x8xf32>,
    return
  }
  func.func @transform_0(%arg0: i32) -> (i32, i32) {
    %c0_i32 = arith.constant 0 : i32
    %c0_i32_0 = arith.constant 0 : i32
    return %arg0, %c0_i32 : i32, i32
  }
  func.func @transform_1(%arg0: i32) -> (i32, i32) {
    %c0_i32 = arith.constant 0 : i32
    %c0_i32_0 = arith.constant 0 : i32
    %c0_i32_1 = arith.constant 0 : i32
    return %c0_i32, %c0_i32_0 : i32, i32
  }
  func.func @transform_2(%arg0: i32) -> (i32, i32) {
    %c0_i32 = arith.constant 0 : i32
    %c0_i32_0 = arith.constant 0 : i32
    %c0_i32_1 = arith.constant 0 : i32
    return %c0_i32, %c0_i32_0 : i32, i32
  }
  func.func @transform_3(%arg0: i32) -> (i32, i32) {
    %c0_i32 = arith.constant 0 : i32
    %c0_i32_0 = arith.constant 0 : i32
    %c0_i32_1 = arith.constant 0 : i32
    return %c0_i32, %c0_i32_0 : i32, i32
  }
  func.func @transform_4(%arg0: i32) -> (i32, i32) {
    %c0_i32 = arith.constant 0 : i32
    %c0_i32_0 = arith.constant 0 : i32
    %c0_i32_1 = arith.constant 0 : i32
    return %c0_i32, %c0_i32_0 : i32, i32
  }
  func.func @transform_5(%arg0: i32) -> (i32, i32) {
    %c0_i32 = arith.constant 0 : i32
    %c0_i32_0 = arith.constant 0 : i32
    return %arg0, %c0_i32 : i32, i32
  }
}

</mosaic_0001>

<bundles_post_ra>
// kernel: tpu_custom_call.1
= control target key start
LH: loop header
LB: loop body
LE: loop exit
PB: predicated region body
PF: predicated region fallthrough
CT: control target
= control target key end

     0   :  { %v385_v7 = vmov 0.0   ;;  %s630_s0 = inlined_call_operand.vmem [shape: f32[1,128], index: 0, kind: input, shape index: {}]   ;;  %s631_s1 = inlined_call_operand.vmem [shape: f32[128,256], index: 1, kind: input, shape index: {}]   ;;  %s632_s2 = inlined_call_operand.vmem [shape: f32[1,256], index: 2, kind: input, shape index: {}]   ;;  %s633_s3 = inlined_call_operand.vmem [shape: f32[256,8], index: 3, kind: input, shape index: {}]   ;;  %s634_s4 = inlined_call_operand.<no memory space> [shape: f32[1,1], index: 4, kind: input, shape index: {}]   ;;  %s635_s5 = inlined_call_operand.hbm [shape: f32[1,8], index: 5, kind: output, shape index: {}]  }
   0x1   :  { %v24_v0 = vld [vmem:[%s631_s1 + $0x8] sm:$0xff]  ;;  %v26_v1 = vld [vmem:[%s631_s1 + $0x18] sm:$0xff]  ;;  %v23_v2 = vld [vmem:[%s631_s1] sm:$0xff]  ;;  %131 = vmatprep.mubr.f32.mxu0 %v385_v7 }
   0x2   :  { %v295_v3 = vpack.c.bf16 %v26_v1, %v24_v0  ;;  %v25_v4 = vld [vmem:[%s631_s1 + $0x10] sm:$0xff]  ;;  %v28_v5 = vld [vmem:[%s631_s1 + $0x28] sm:$0xff]  ;;  %v30_v6 = vld [vmem:[%s631_s1 + $0x38] sm:$0xff] }
   0x3   :  { %v297_v8 = vpack.c.bf16 %v25_v4, %v23_v2  ;;  %v299_v9 = vpack.c.bf16 %v30_v6, %v28_v5  ;;  %v27_v10 = vld [vmem:[%s631_s1 + $0x20] sm:$0xff]  ;;  %v29_v11 = vld [vmem:[%s631_s1 + $0x30] sm:$0xff]  ;;  %v32_v12 = vld [vmem:[%s631_s1 + $0x48] sm:$0xff] }
   0x4   :  { %296 = vmatprep.subr.bf16.mxu0 %v295_v3  ;;  %v34_v13 = vld [vmem:[%s631_s1 + $0x58] sm:$0xff]  ;;  %v301_v14 = vpack.c.bf16 %v29_v11, %v27_v10  ;;  %v31_v16 = vld [vmem:[%s631_s1 + $0x40] sm:$0xff]  ;;  %v33_v17 = vld [vmem:[%s631_s1 + $0x50] sm:$0xff] }
   0x5   :  { %298 = vmatpush1.bf16.msra.mxu0 %v297_v8  ;;  %v303_v15 = vpack.c.bf16 %v34_v13, %v32_v12  ;;  %v36_v18 = vld [vmem:[%s631_s1 + $0x68] sm:$0xff]  ;;  %v38_v19 = vld [vmem:[%s631_s1 + $0x78] sm:$0xff]  ;;  %v305_v20 = vpack.c.bf16 %v33_v17, %v31_v16  ;;  %v35_v22 = vld [vmem:[%s631_s1 + $0x60] sm:$0xff] }
   0x6   :  { %300 = vmatprep.subr.bf16.mxu0 %v299_v9  ;;  %v307_v21 = vpack.c.bf16 %v38_v19, %v36_v18  ;;  %v37_v23 = vld [vmem:[%s631_s1 + $0x70] sm:$0xff]  ;;  %v40_v24 = vld [vmem:[%s631_s1 + $0x88] sm:$0xff]  ;;  %v42_v25 = vld [vmem:[%s631_s1 + $0x98] sm:$0xff] }
   0x7   :  { %v39_v26 = vld [vmem:[%s631_s1 + $0x80] sm:$0xff]  ;;  %v41_v27 = vld [vmem:[%s631_s1 + $0x90] sm:$0xff]  ;;  %v157_v29 = vld [vmem:[%s633_s3 + $0x88] sm:$0xff]  ;;  %v309_v31 = vpack.c.bf16 %v37_v23, %v35_v22  ;;  %v311_v36 = vpack.c.bf16 %v42_v25, %v40_v24 }
   0x8   :  { %v156_v28 = vld [vmem:[%s633_s3 + $0x80] sm:$0xff]  ;;  %v141_v33 = vld [vmem:[%s633_s3 + $0x8] sm:$0xff]  ;;  %v158_v34 = vld [vmem:[%s633_s3 + $0x90] sm:$0xff]  ;;  %v313_v46 = vpack.c.bf16 %v41_v27, %v39_v26 }
   0x9   :  { %302 = vmatpush1.bf16.msra.mxu0 %v301_v14  ;;  %v140_v30 = vld [vmem:[%s633_s3] sm:$0xff]  ;;  %v327_v32 = vpack.c.bf16 %v157_v29, %v156_v28  ;;  %v159_v35 = vld [vmem:[%s633_s3 + $0x98] sm:$0xff]  ;;  %v142_v39 = vld [vmem:[%s633_s3 + $0x10] sm:$0xff] }
   0xa   :  { %304 = vmatprep.subr.bf16.mxu0 %v303_v15  ;;  %v329_v37 = vpack.c.bf16 %v141_v33, %v140_v30  ;;  %v331_v38 = vpack.c.bf16 %v159_v35, %v158_v34  ;;  %v143_v40 = vld [vmem:[%s633_s3 + $0x18] sm:$0xff]  ;;  %v160_v41 = vld [vmem:[%s633_s3 + $0xa0] sm:$0xff]  ;;  %v44_v42 = vld [vmem:[%s631_s1 + $0xa8] sm:$0xff] }
   0xb   :  { %v46_v43 = vld [vmem:[%s631_s1 + $0xb8] sm:$0xff]  ;;  %328 = vmatprep.subr.bf16.mxu1 %v327_v32  ;;  %v161_v44 = vld [vmem:[%s633_s3 + $0xa8] sm:$0xff]  ;;  %v333_v45 = vpack.c.bf16 %v143_v40, %v142_v39  ;;  %v43_v47 = vld [vmem:[%s631_s1 + $0xa0] sm:$0xff] }
   0xc   :  { %330 = vmatpush3.bf16.msra.mxu1 %v329_v37  ;;  %v335_v48 = vpack.c.bf16 %v161_v44, %v160_v41  ;;  %v144_v49 = vld [vmem:[%s633_s3 + $0x20] sm:$0xff]  ;;  %v145_v50 = vld [vmem:[%s633_s3 + $0x28] sm:$0xff]  ;;  %v315_v51 = vpack.c.bf16 %v46_v43, %v44_v42  ;;  %v45_v52 = vld [vmem:[%s631_s1 + $0xb0] sm:$0xff] }
   0xd   :  { %306 = vmatpush1.bf16.msra.mxu0 %v305_v20  ;;  %332 = vmatprep.subr.bf16.mxu1 %v331_v38  ;;  %v162_v53 = vld [vmem:[%s633_s3 + $0xb0] sm:$0xff]  ;;  %v163_v54 = vld [vmem:[%s633_s3 + $0xb8] sm:$0xff]  ;;  %v48_v55 = vld [vmem:[%s631_s1 + $0xc8] sm:$0xff]  ;;  %v337_v58 = vpack.c.bf16 %v145_v50, %v144_v49  ;;  %v317_v59 = vpack.c.bf16 %v45_v52, %v43_v47 }
   0xe   :  { %308 = vmatprep.subr.bf16.mxu0 %v307_v21  ;;  %v50_v56 = vld [vmem:[%s631_s1 + $0xd8] sm:$0xff]  ;;  %v47_v57 = vld [vmem:[%s631_s1 + $0xc0] sm:$0xff]  ;;  %v339_v60 = vpack.c.bf16 %v163_v54, %v162_v53  ;;  %v146_v61 = vld [vmem:[%s633_s3 + $0x30] sm:$0xff] }
   0xf   :  { %v147_v62 = vld [vmem:[%s633_s3 + $0x38] sm:$0xff] }
  0x10   :  { %334 = vmatpush3.bf16.msra.mxu1 %v333_v45 }
  0x11   :  { %310 = vmatpush1.bf16.msra.mxu0 %v309_v31  ;;  %336 = vmatprep.subr.bf16.mxu1 %v335_v48 }
  0x12   :  { %312 = vmatprep.subr.bf16.mxu0 %v311_v36 }
  0x15   :  { %314 = vmatpush1.bf16.msra.mxu0 %v313_v46 }
  0x16   :  { %11 = vsyncpa [#allocation4], 0  ;;  %316 = vmatprep.subr.bf16.mxu0 %v315_v51  ;;  %v319_v63 = vpack.c.bf16 %v50_v56, %v48_v55  ;;  %v49_v0 = vld [vmem:[%s631_s1 + $0xd0] sm:$0xff]  ;;  %v164_v1 = vld [vmem:[%s633_s3 + $0xc0] sm:$0xff]  ;;  %338 = vmatpush3.bf16.msra.mxu1 %v337_v58  ;;  %v341_v5 = vpack.c.bf16 %v147_v62, %v146_v61  ;;  %v57_v34 = vlaneseq  ;;  %v173_v48 = vstv %s634_s4  ;;  %s386_s24 = smov [#allocation3]  }
  0x17   :  { %v165_v2 = vld [vmem:[%s633_s3 + $0xc8] sm:$0xff]  ;;  %v54_v4 = vld [vmem:[%s631_s1 + $0xf8] sm:$0xff]  ;;  %v321_v6 = vpack.c.bf16 %v49_v0, %v47_v57  ;;  %v51_v7 = vld [vmem:[%s631_s1 + $0xe0] sm:$0xff]  ;;  %340 = vmatprep.subr.bf16.mxu1 %v339_v60  ;;  %s252_s25 = sshll.u32 %s386_s24, 4  ;;  %vm244_vm0 = vcmask 57344   ;;  %s253_s25 = int_to_ptr.vmem [resolvable:$true] %s252_s25 }
  0x18   :  { %v52_v3 = vld [vmem:[%s631_s1 + $0xe8] sm:$0xff]  ;;  %v343_v8 = vpack.c.bf16 %v165_v2, %v164_v1  ;;  %v148_v9 = vld [vmem:[%s633_s3 + $0x40] sm:$0xff]  ;;  %v53_v12 = vld [vmem:[%s631_s1 + $0xf0] sm:$0xff]  ;;  %v58_v35 = vshrl.u32 %v57_v34, 7  ;;  %s365_s26 = scalar_lea.vmem %s253_s25, 32  ;;  %p366_p1 = scmp.lt.s32.totalorder %s253_s25, %s253_s25 }
  0x19   :  { %318 = vmatpush1.bf16.msra.mxu0 %v317_v59  ;;  %v149_v10 = vld [vmem:[%s633_s3 + $0x48] sm:$0xff]  ;;  %v323_v11 = vpack.c.bf16 %v54_v4, %v52_v3  ;;  %v166_v13 = vld [vmem:[%s633_s3 + $0xd0] sm:$0xff]  ;;  %v167_v14 = vld [vmem:[%s633_s3 + $0xd8] sm:$0xff]  ;;  %v325_v16 = vpack.c.bf16 %v53_v12, %v51_v7 }
  0x1a   :  { %320 = vmatprep.subr.bf16.mxu0 %v319_v63  ;;  %342 = vmatpush3.bf16.msra.mxu1 %v341_v5  ;;  %v345_v15 = vpack.c.bf16 %v149_v10, %v148_v9  ;;  %v347_v17 = vpack.c.bf16 %v167_v14, %v166_v13  ;;  %v150_v18 = vld [vmem:[%s633_s3 + $0x50] sm:$0xff]  ;;  %v151_v19 = vld [vmem:[%s633_s3 + $0x58] sm:$0xff]  ;;  %v168_v20 = vld [vmem:[%s633_s3 + $0xe0] sm:$0xff]  ;;  %v59_v36 = vsub.s32 0, %v58_v35  ;;  %v63_v38 = vsub.s32 1, %v58_v35 }
  0x1b   :  { %344 = vmatprep.subr.bf16.mxu1 %v343_v8  ;;  %v169_v21 = vld [vmem:[%s633_s3 + $0xe8] sm:$0xff]  ;;  %v349_v22 = vpack.c.bf16 %v151_v19, %v150_v18  ;;  %v22_v23 = vld [vmem:[%s630_s0] sm:$0x1]  ;;  %v170_v28 = vld [vmem:[%s633_s3 + $0xf0] sm:$0xff] }
  0x1c   :  { %v351_v24 = vpack.c.bf16 %v169_v21, %v168_v20  ;;  %v152_v25 = vld [vmem:[%s633_s3 + $0x60] sm:$0xff]  ;;  %v153_v26 = vld [vmem:[%s633_s3 + $0x68] sm:$0xff]  ;;  %v171_v29 = vld [vmem:[%s633_s3 + $0xf8] sm:$0xff] }
  0x1d   :  { %322 = vmatpush1.bf16.msra.mxu0 %v321_v6  ;;  %v353_v27 = vpack.c.bf16 %v153_v26, %v152_v25  ;;  %v355_v30 = vpack.c.bf16 %v171_v29, %v170_v28  ;;  %v154_v31 = vld [vmem:[%s633_s3 + $0x70] sm:$0xff]  ;;  %v155_v32 = vld [vmem:[%s633_s3 + $0x78] sm:$0xff]  ;;  %v55_v37 = vld [vmem:[%s632_s2] sm:$0x3]  ;;  %s361_s2 = scalar_lea.vmem %s253_s25, 16 }
  0x1e   :  { %324 = vmatprep.subr.bf16.mxu0 %v323_v11  ;;  %346 = vmatpush3.bf16.msra.mxu1 %v345_v15  ;;  %v357_v33 = vpack.c.bf16 %v155_v32, %v154_v31  ;;  %v60_v39 = vrot.slane %v55_v37, %v59_v36  ;;  %v64_v40 = vrot.slane %v55_v37, %v63_v38  ;;  %p362_p0 = scmp.ne.s32.totalorder %s253_s25, %s361_s2  ;;  %p367_p2 = scmp.lt.s32.totalorder %s365_s26, %s361_s2 }
  0x1f   :  { %348 = vmatprep.subr.bf16.mxu1 %v347_v17 }
  0x20   :  { %p368_p3 = por %p367_p2, %p366_p1 }
  0x21   :  { %326 = vmatpush1.bf16.msra.mxu0 %v325_v16 }
  0x22   :  { %350 = vmatpush3.bf16.msra.mxu1 %v349_v22  ;;  %p369_p4 = pnand %p368_p3, %p362_p0 }
  0x23   :  { %352 = vmatprep.subr.bf16.mxu1 %v351_v24 }
  0x24   :  { %132 = vmatmul.mubr.f32.vlgmr.msra.gmra.mrb[0].mxu0 %v22_v23 }
  0x26   :  { %354 = vmatpush3.bf16.msra.mxu1 %v353_v27 }
  0x27   :  { %356 = vmatprep.subr.bf16.mxu1 %v355_v30 }
  0x2a   :  { %358 = vmatpush3.bf16.msra.mxu1 %v357_v33 }
  0xf7   :  { %v133_v41 = vpop.f32.mrb[0].mxu0 }
  0xf8   :  { %v134_v42 = vadd.f32 %v133_v41, %v60_v39  ;;  %v135_v43 = vpop.f32.mrb[1].mxu0 }
  0xf9   :  { %v136_v44 = vadd.f32 %v135_v43, %v64_v40 }
  0xfa   :  { %v138_v46 = vmax.f32 %v134_v42, 0.0 }
  0xfb   :  { %v139_v45 = vmax.f32 %v136_v44, 0.0 }
  0xfd   :  { %238 = vmatprep.mubr.f32.mxu1 %v139_v45 }
  0xfe   :  { %239 = vmatmul.mubr.f32.vlgmr.msra.gmra.mrb[0].mxu1 %v138_v46 }
 0x1d1   :  { %v292_v47 = vpop.f32.mrb[0].mxu1 }
 0x1d2   :  { %v293_v49 = vpop.f32.mrb[1].mxu1 }
 0x1d3   :  { %v294_v50 = vadd.f32 %v293_v49, %v292_v47 }
 0x1d5   :  { %v241_v51 = vadd.f32 %v294_v50, %v173_v48 }
 0x1d7   :  { %245 = vst.msk [vmem:[#allocation3] sm:$0x1] %vm244_vm0, %v241_v51 }
 0x1d8   :  { %372 = shalt.err (!%p369_p4)
}
 0x1d9   :  { %s373_s4 = scalar_lea.hbm %s635_s5, 16 }
 0x1da   :  { %p374_p5 = scmp.ne.s32.totalorder %s635_s5, %s373_s4  ;;  %p377_p6 = scmp.lt.u32.totalorder %s373_s4, %s635_s5 }
 0x1dc   :  { %p379_p7 = pnand %p377_p6, %p374_p5 }
 0x1de   :  { %382 = shalt.err (!%p379_p7)
}
 0x1df   :  { %255 = dma.vmem_to_hbm [thread:$0]  %s253_s25, 16, %s635_s5, [#allocation4]  }
 0x1e0   :  { %383 = dma.done.wait [#allocation4], 16  }
 0x1e1   :  { %384 = vsyncadd [#allocation4], 4294967280 }
 0x1e2   :  { %259 = vsyncpa [#allocation4], 1 }

</bundles_post_ra>
